<compile_context>
chip_gen: v7x
topology: tpu7x:2x2x1
jax: 0.10.0
libtpu: 0.0.40
codegen_flags: <defaults>
</compile_context>

<pallas_src>
import jax
import jax.numpy as jnp
from jax.experimental import pallas as pl
from jax.experimental.pallas import tpu as pltpu


def pfn_kernel(x_ref, w_ref, shift_ref, out_ref):
    # x_ref: (TP, N, Cin) bf16/f32, w_ref: (Cin, Cout) (BN scale pre-folded),
    # shift_ref: (1, Cout) f32, out_ref: (TP, N, 2*Cout) f32.
    tp, n, cin = x_ref.shape
    cout = w_ref.shape[1]

    x = x_ref[...]
    # Linear (no bias; BN scale folded into w): MXU matmul, f32 accumulation.
    y = jnp.dot(x.reshape(tp * n, cin), w_ref[...],
                preferred_element_type=jnp.float32)          # (TP*N, Cout)
    # Folded BatchNorm shift + ReLU on the VPU.
    y = jnp.maximum(y + shift_ref[...], 0.0)
    y = y.reshape(tp, n, cout)

    # Pillar-wise max over the points axis (dim=1).
    y_max = jnp.max(y, axis=1, keepdims=True)                # (TP, 1, Cout)

    # Two direct slice stores instead of materializing the concatenation.
    out_ref[:, :, :cout] = y.astype(out_ref.dtype)
    out_ref[:, :, cout:2 * cout] = jnp.broadcast_to(
        y_max, (tp, n, cout)).astype(out_ref.dtype)


def pfn_layer(inputs, weight, bn_gamma, bn_beta, bn_mean, bn_var,
              eps=1e-3, tile_p=256, compute_dtype=jnp.bfloat16):
    """PFNLayer forward (use_norm=True, last_layer=False).

    inputs: (P, N, Cin) float32; weight: (Cout, Cin) as in nn.Linear (no bias).
    Returns (P, N, 2*Cout) float32.
    """
    P, N, Cin = inputs.shape
    Cout = weight.shape[0]

    # Fold BN (eval mode) into the weights (scale) and a per-channel shift.
    scale = (bn_gamma / jnp.sqrt(bn_var + eps)).astype(jnp.float32)      # (Cout,)
    shift = (bn_beta - bn_mean * scale).reshape(1, Cout).astype(jnp.float32)
    w_scaled = (weight.T.astype(jnp.float32) * scale[None, :]).astype(compute_dtype)

    # bf16 inputs halve HBM read bytes / input VMEM. In a real pipeline the
    # producing op would emit this dtype directly instead of casting here.
    x = inputs.astype(compute_dtype)

    # Tile the pillar axis; cap at P//2 so the grid has >= 2 steps (v7x has two
    # TensorCores). Zero-pad P up to a tile multiple (pillars are independent,
    # padded rows are sliced off below).
    tile_p = max(1, min(tile_p, max(1, P // 2)))
    rem = P % tile_p
    if rem:
        x = jnp.pad(x, ((0, tile_p - rem), (0, 0), (0, 0)))
    P_pad = x.shape[0]
    grid = (P_pad // tile_p,)

    out_bytes = P_pad * N * 2 * Cout * 4
    in_bytes = (x.size * x.dtype.itemsize
                + w_scaled.size * w_scaled.dtype.itemsize
                + shift.size * 4)
    cost = pl.CostEstimate(flops=2 * P_pad * N * Cin * Cout,
                           transcendentals=0,
                           bytes_accessed=in_bytes + out_bytes)

    out = pl.pallas_call(
        pfn_kernel,
        out_shape=jax.ShapeDtypeStruct((P_pad, N, 2 * Cout), jnp.float32),
        grid_spec=pltpu.PrefetchScalarGridSpec(
            num_scalar_prefetch=0,
            grid=grid,
            in_specs=[
                pl.BlockSpec((tile_p, N, Cin), lambda i: (i, 0, 0)),
                pl.BlockSpec((Cin, Cout), lambda i: (0, 0)),
                pl.BlockSpec((1, Cout), lambda i: (0, 0)),
            ],
            out_specs=pl.BlockSpec((tile_p, N, 2 * Cout), lambda i: (i, 0, 0)),
        ),
        compiler_params=pltpu.CompilerParams(
            dimension_semantics=("parallel",),
            vmem_limit_bytes=48 * 1024 * 1024,
        ),
        cost_estimate=cost,
    )(x, w_scaled, shift)

    return out[:P] if P_pad != P else out


def pfn_layer_ref(inputs, weight, bn_gamma, bn_beta, bn_mean, bn_var,
                  eps=1e-3, compute_dtype=jnp.float32):
    """Pure-JAX reference. compute_dtype=bfloat16 mirrors the kernel's rounding
    of x and the scale-folded weights (accumulation stays f32)."""
    scale = bn_gamma / jnp.sqrt(bn_var + eps)
    shift = bn_beta - bn_mean * scale
    x = inputs.astype(compute_dtype).astype(jnp.float32)
    w = (weight.T * scale[None, :]).astype(compute_dtype).astype(jnp.float32)
    y = jnp.einsum("pnc,co->pno", x, w, precision=jax.lax.Precision.HIGHEST)
    y = jnp.maximum(y + shift, 0.0)
    y_max = jnp.max(y, axis=1, keepdims=True)
    return jnp.concatenate([y, jnp.broadcast_to(y_max, y.shape)], axis=2)


if __name__ == "__main__":
    key = jax.random.PRNGKey(0)
    k_x, k_w, k_g, k_b, k_m, k_v = jax.random.split(key, 6)

    # Small shapes implied by the module: P pillars, N points, Cin point feats.
    P, N, Cin = 16, 32, 10
    out_channels = 64          # PFNLayer out_channels
    Cout = out_channels // 2   # not last layer -> halved

    inputs = jax.random.normal(k_x, (P, N, Cin), dtype=jnp.float32)
    weight = jax.random.normal(k_w, (Cout, Cin), dtype=jnp.float32) * 0.1
    bn_gamma = 1.0 + 0.1 * jax.random.normal(k_g, (Cout,), dtype=jnp.float32)
    bn_beta = 0.1 * jax.random.normal(k_b, (Cout,), dtype=jnp.float32)
    bn_mean = 0.05 * jax.random.normal(k_m, (Cout,), dtype=jnp.float32)
    bn_var = jnp.abs(1.0 + 0.1 * jax.random.normal(k_v, (Cout,), dtype=jnp.float32))

    out = pfn_layer(inputs, weight, bn_gamma, bn_beta, bn_mean, bn_var)
    out = jax.block_until_ready(out)
    assert out.shape == (P, N, 2 * Cout), out.shape

    # Tight check vs. a reference that applies the same bf16 rounding to x / W.
    ref_q = pfn_layer_ref(inputs, weight, bn_gamma, bn_beta, bn_mean, bn_var,
                          compute_dtype=jnp.bfloat16)
    assert jnp.allclose(out, ref_q, atol=1e-4, rtol=1e-4), \
        "mismatch vs bf16-matched reference"

    # Sanity check vs. the module's full-f32 math (bf16 matmul inputs in kernel).
    ref_f32 = pfn_layer_ref(inputs, weight, bn_gamma, bn_beta, bn_mean, bn_var)
    assert jnp.allclose(out, ref_f32, atol=2e-2, rtol=2e-2), \
        "mismatch vs f32 reference"

    print("KERNEL_OK")
</pallas_src>

<mosaic_0001>
module attributes {stable_mosaic.version = 11 : i64} {
  func.func @pfn_kernel(%arg0: i32, %arg1: memref<8x32x10xbf16, #tpu.memory_space<vmem>>, %arg2: memref<10x32xbf16, #tpu.memory_space<vmem>>, %arg3: memref<1x32xf32, #tpu.memory_space<vmem>>, %arg4: memref<8x32x64xf32, #tpu.memory_space<vmem>>) attributes {dimension_semantics = [#tpu.dimension_semantics<parallel>], iteration_bounds = array<i64: 2>, scalar_prefetch = 0 : i64, scratch_operands = 0 : i64, tpu.core_type = #tpu.core_type<tc>, window_params = [{transform_indices = @transform_0, window_bounds = array<i64: 8, 32, 10>}, {pipeline_mode = #tpu.pipeline_mode<synchronous>, transform_indices = @transform_1, window_bounds = array<i64: 10, 32>}, {pipeline_mode = #tpu.pipeline_mode<synchronous>, transform_indices = @transform_2, window_bounds = array<i64: 1, 32>}, {transform_indices = @transform_3, window_bounds = array<i64: 8, 32, 64>}]} {
    %c0 = arith.constant 0 : index
    %c0_0 = arith.constant 0 : index
    %c0_1 = arith.constant 0 : index
    %0 = vector.load %arg1[%c0, %c0_0, %c0_1] : memref<8x32x10xbf16, #tpu.memory_space<vmem>>, vector<8x32x10xbf16>
    %1 = vector.shape_cast %0 : vector<8x32x10xbf16> to vector<256x10xbf16>
    %c0_2 = arith.constant 0 : index
    %c0_3 = arith.constant 0 : index
    %2 = vector.load %arg2[%c0_2, %c0_3] : memref<10x32xbf16, #tpu.memory_space<vmem>>, vector<10x32xbf16>
    %cst = arith.constant dense<0.000000e+00> : vector<256x32xf32>
    %3 = tpu.matmul %1, %2, %cst {dimension_numbers = #tpu.dot_dimension_numbers<[1], [0], [0], [1], [0, 0, 1, 1], [], []>} : vector<256x10xbf16>, vector<10x32xbf16>, vector<256x32xf32> -> vector<256x32xf32>
    %c0_4 = arith.constant 0 : index
    %c0_5 = arith.constant 0 : index
    %4 = vector.load %arg3[%c0_4, %c0_5] : memref<1x32xf32, #tpu.memory_space<vmem>>, vector<1x32xf32>
    %5 = vector.broadcast %4 : vector<1x32xf32> to vector<256x32xf32>
    %6 = arith.addf %3, %5 : vector<256x32xf32>
    %cst_6 = arith.constant 0.000000e+00 : f32
    %7 = vector.broadcast %cst_6 : f32 to vector<256x32xf32>
    %8 = arith.maximumf %6, %7 : vector<256x32xf32>
    %9 = vector.shape_cast %8 : vector<256x32xf32> to vector<8x32x32xf32>
    %cst_7 = arith.constant dense<0xFF800000> : vector<8x32xf32>
    %10 = vector.multi_reduction <maximumf>, %9, %cst_7 [1] : vector<8x32x32xf32> to vector<8x32xf32>
    %11 = vector.shape_cast %10 : vector<8x32xf32> to vector<8x1x32xf32>
    %c0_8 = arith.constant 0 : index
    %c0_9 = arith.constant 0 : index
    %c0_10 = arith.constant 0 : index
    %12 = vector.load %arg4[%c0_8, %c0_9, %c0_10] : memref<8x32x64xf32, #tpu.memory_space<vmem>>, vector<8x32x32xf32>
    tpu.vector_store %arg4[%c0_8, %c0_9, %c0_10], %9 {strides = array<i32>} : memref<8x32x64xf32, #tpu.memory_space<vmem>>, vector<8x32x32xf32>,
    %13 = vector.shape_cast %11 : vector<8x1x32xf32> to vector<8x1x32xf32>
    %14 = vector.broadcast %13 : vector<8x1x32xf32> to vector<8x32x32xf32>
    %c0_11 = arith.constant 0 : index
    %c0_12 = arith.constant 0 : index
    %c32 = arith.constant 32 : index
    %15 = vector.load %arg4[%c0_11, %c0_12, %c32] : memref<8x32x64xf32, #tpu.memory_space<vmem>>, vector<8x32x32xf32>
    tpu.vector_store %arg4[%c0_11, %c0_12, %c32], %14 {strides = array<i32>} : memref<8x32x64xf32, #tpu.memory_space<vmem>>, vector<8x32x32xf32>,
    return
  }
  func.func @transform_0(%arg0: i32) -> (i32, i32, i32) {
    %c0_i32 = arith.constant 0 : i32
    %c0_i32_0 = arith.constant 0 : i32
    %c0_i32_1 = arith.constant 0 : i32
    return %arg0, %c0_i32, %c0_i32_0 : i32, i32, i32
  }
  func.func @transform_1(%arg0: i32) -> (i32, i32) {
    %c0_i32 = arith.constant 0 : i32
    %c0_i32_0 = arith.constant 0 : i32
    %c0_i32_1 = arith.constant 0 : i32
    return %c0_i32, %c0_i32_0 : i32, i32
  }
  func.func @transform_2(%arg0: i32) -> (i32, i32) {
    %c0_i32 = arith.constant 0 : i32
    %c0_i32_0 = arith.constant 0 : i32
    %c0_i32_1 = arith.constant 0 : i32
    return %c0_i32, %c0_i32_0 : i32, i32
  }
  func.func @transform_3(%arg0: i32) -> (i32, i32, i32) {
    %c0_i32 = arith.constant 0 : i32
    %c0_i32_0 = arith.constant 0 : i32
    %c0_i32_1 = arith.constant 0 : i32
    return %arg0, %c0_i32, %c0_i32_0 : i32, i32, i32
  }
}

</mosaic_0001>

<bundles_post_ra>
// kernel: tpu_custom_call.1
= control target key start
LH: loop header
LB: loop body
LE: loop exit
PB: predicated region body
PF: predicated region fallthrough
CT: control target
= control target key end

     0   :  { %8 = vsyncpa [#allocation3], 0  ;;  %s1439_s0 = inlined_call_operand.vmem [shape: bf16[16,32,10], index: 0, kind: input, shape index: {}]   ;;  %s1440_s1 = inlined_call_operand.vmem [shape: bf16[10,32], index: 1, kind: input, shape index: {}]   ;;  %s1441_s2 = inlined_call_operand.vmem [shape: f32[1,32], index: 2, kind: input, shape index: {}]   ;;  %s1442_s3 = inlined_call_operand.hbm [shape: f32[16,32,64], index: 3, kind: output, shape index: {}]  }
   0x1   :  { %10 = vsyncpa [#allocation3 + $0x1], 0  ;;  %s1080_s12 = smov 0   ;;  %s1082_s13 = smov 0  }
   0x2   :  { %s1084_s14 = smov 0   ;;  %s1086_s15 = smov 0  }
   0x3 LB: > { %s1101_s16 = sadd.s32 4294967295, %s1054_s15   ;;  %s827_s17 = sadd.s32 4294967294, %s1054_s15   ;;  %s1054_s15 = sphi %s1086_s15, %s1448_s15   ;;  %s1050_s14 = sphi %s1084_s14, %s1447_s14   ;;  %s1046_s13 = sphi %s1082_s13, %s1446_s13   ;;  %s1042_s12 = sphi %s1080_s12, %s1445_s12  }
   0x4   : > { %s1105_s18 = sadd.s32 1, %s1054_s15   ;;  %s91_s19 = sadd.s32 1, %s1050_s14 }
   0x5   : > { %s88_s20 = ssub.s32 %s1054_s15, %s1105_s18  ;;  %p101_p0 = scmp.ne.s32.totalorder %s1050_s14, %s1046_s13 }
   0x6   : > { %p89_p1 = scmp.eq.s32.totalorder %s88_s20, 0  ;;  %p102_p2 = scmp.eq.s32.totalorder %s1101_s16, 1 }
   0x7   : > { %p107_p3 = scmp.ne.s32.totalorder %s1046_s13, %s1042_s12  ;;  %p108_p4 = scmp.eq.s32.totalorder %s827_s17, 1 }
   0x8   : > { %s1116_s21 = scalar_select %p89_p1, %s1050_s14, %s91_s19  }
   0x9   : > { %p1118_p5 = por %p102_p2, %p101_p0  ;;  %p1122_p6 = por %p108_p4, %p107_p3 }
   0xa   : > { %p830_p7 = scmp.ge.s32.totalorder %s1054_s15, 1  ;;  %p142_p8 = scmp.lt.s32.totalorder %s1054_s15, 3 }
   0xc   : > { %p143_p9 = pnand %p830_p7, %p142_p8 }
   0xd   : > { %v975_v0 = vld [vmem:[%s1440_s1] sm:$0x1f] (!%p143_p9)   ;;  %vm351_vm0 = vcmask (!%p143_p9), 1044480   ;;  %s832_s26 = sshll.u32 (!%p143_p9), %s1101_s16, 3  ;;  %vm302_vm1 = vcmask (!%p143_p9), 80896   ;;  %s164_s4 = sand.u32 (!%p143_p9), 1, %s1046_s13  }
   0xe   : > { %146 = sbr.rel (%p143_p9) target bundleno = 426 (0x1aa), region = 32  ;;  %931 = vmatprep.subr.msk.bf16.mxu0 (!%p143_p9), %vm351_vm0, %v975_v0  ;;  %932 = vmatprep.subr.msk.bf16.mxu1 (!%p143_p9), %vm351_vm0, %v975_v0  ;;  %v353_v1 = vsel (!%p143_p9), %vm351_vm0, %v975_v0, 0  ;;  %p168_p10 = scmp.lt.s32.totalorder (!%p143_p9), %s832_s26, 15  ;;  %v1173_v18 = vld [vmem:[%s1441_s2] ss:$0 sm:$0xff] (!%p143_p9)  ;;  %vm548_vm2 = vcmask (!%p143_p9), 261120  }
   0xf   : > { %896 = vmatpush3.bf16.msra.mxu0 (!%p143_p9), %v353_v1  ;;  %930 = vmatpush3.bf16.msra.mxu1 (!%p143_p9), %v353_v1  ;;  %s831_s7 = sshll.u32 (!%p143_p9), %s164_s4, 8  ;;  %s1056_s9 = smov (!%p143_p9), 32   ;;  %vm717_vm3 = vcmask (!%p143_p9), 523520  }
  0x10   : > { %s1184_s8 = scalar_lea.vmem (!%p143_p9), [#allocation2], %s831_s7  ;;  %s877_s10 = sshll.u32 (!%p143_p9), %s1101_s16, 12 }
  0x11   : > { %s765_s11 = sshll.u32 (!%p143_p9), %s1184_s8, 4  ;;  %s1384_s20 = scalar_lea.hbm (!%p143_p9), %s1442_s3, %s877_s10  ;;  %s1386_s11 = int_to_ptr.vmem [resolvable:$true] %s765_s11 }
  0x12   : > { %s1398_s16 = scalar_lea.sflag (!%p143_p9), [#allocation3], %s164_s4  ;;  %s992_s24 = scalar_lea.vmem (!%p143_p9), %s1386_s11, 4096 }
  0x13   : > { %p993_p11 = scmp.ne.s32.totalorder (!%p143_p9), %s1386_s11, %s992_s24  ;;  %s1057_s25 = smov (!%p143_p9), [#allocation2]  }
  0x15   : > { %s1450_s26 = smov (!%p168_p10, %s832_s26), 15  ;;  %p994_p12 = pnand %p993_p11, %p1118_p5 }
  0x16   : > { %s875_s27 = sshll.u32 %s1450_s26, 4  ;;  %s996_s26 = sshll.u32 %s1057_s25, 4  ;;  %s997_s26 = int_to_ptr.vmem [resolvable:$false] %s996_s26 }
  0x17   : > { %s1135_s30 = scalar_lea.vmem %s1439_s0, %s875_s27  ;;  %p995_p13 = pneg %p994_p12 }
  0x18   : > { %v976_v2 = vld [vmem:[%s1135_s30] sm:$0xff]   ;;  %v978_v4 = vld [vmem:[%s1135_s30 + $0x8] sm:$0xff]   ;;  %v980_v6 = vld [vmem:[%s1135_s30 + $0x10] sm:$0xff]   ;;  %s998_s27 = scalar_lea.vmem %s997_s26, 8192  ;;  %p999_p0 = scmp.lt.s32.totalorder %s1386_s11, %s997_s26 }
  0x19   : > { %v977_v3 = vld [vmem:[%s1135_s30 + $0x40] sm:$0xff]   ;;  %897 = vmatprep.mubr.msk.bf16.mxu0 %vm302_vm1, %v976_v2  ;;  %v979_v5 = vld [vmem:[%s1135_s30 + $0x48] sm:$0xff]   ;;  %v981_v7 = vld [vmem:[%s1135_s30 + $0x50] sm:$0xff]   ;;  %p1000_p1 = scmp.lt.s32.totalorder %s998_s27, %s992_s24 }
  0x1a   : > { %913 = vmatprep.mubr.msk.bf16.mxu1 %vm302_vm1, %v977_v3  ;;  %898 = vmatmul.mubr.msk.bf16.vlgmr.msra.gmra.mrb[0].mxu0 %vm302_vm1, %v978_v4  ;;  %v982_v8 = vld [vmem:[%s1135_s30 + $0x18] sm:$0xff]   ;;  %v984_v10 = vld [vmem:[%s1135_s30 + $0x20] sm:$0xff]   ;;  %v986_v12 = vld [vmem:[%s1135_s30 + $0x28] sm:$0xff]  }
  0x1b   : > { %914 = vmatmul.mubr.msk.bf16.vlgmr.msra.gmra.mrb[0].mxu1 %vm302_vm1, %v979_v5  ;;  %901 = vmatprep.mubr.msk.bf16.mxu0 %vm302_vm1, %v980_v6  ;;  %v983_v9 = vld [vmem:[%s1135_s30 + $0x58] sm:$0xff]   ;;  %v985_v11 = vld [vmem:[%s1135_s30 + $0x60] sm:$0xff]   ;;  %v987_v13 = vld [vmem:[%s1135_s30 + $0x68] sm:$0xff]   ;;  %p1001_p2 = por %p1000_p1, %p999_p0 }
  0x1c   : > { %917 = vmatprep.mubr.msk.bf16.mxu1 %vm302_vm1, %v981_v7  ;;  %v988_v14 = vld [vmem:[%s1135_s30 + $0x30] sm:$0xff]   ;;  %v990_v16 = vld [vmem:[%s1135_s30 + $0x38] sm:$0xff]  }
  0x1d   : > { %v989_v15 = vld [vmem:[%s1135_s30 + $0x70] sm:$0xff]   ;;  %v991_v17 = vld [vmem:[%s1135_s30 + $0x78] sm:$0xff]   ;;  %p1002_p3 = pnand %p1001_p2, %p995_p13 }
  0x22   : > { %902 = vmatmul.mubr.msk.bf16.gmra.mrb[4].mxu0 %vm302_vm1, %v982_v8 }
  0x23   : > { %918 = vmatmul.mubr.msk.bf16.gmra.mrb[4].mxu1 %vm302_vm1, %v983_v9  ;;  %905 = vmatprep.mubr.msk.bf16.mxu0 %vm302_vm1, %v984_v10 }
  0x24   : > { %921 = vmatprep.mubr.msk.bf16.mxu1 %vm302_vm1, %v985_v11 }
  0x2a   : > { %906 = vmatmul.mubr.msk.bf16.gmra.mrb[8].mxu0 %vm302_vm1, %v986_v12 }
  0x2b   : > { %922 = vmatmul.mubr.msk.bf16.gmra.mrb[8].mxu1 %vm302_vm1, %v987_v13  ;;  %909 = vmatprep.mubr.msk.bf16.mxu0 %vm302_vm1, %v988_v14 }
  0x2c   : > { %925 = vmatprep.mubr.msk.bf16.mxu1 %vm302_vm1, %v989_v15 }
  0x32   : > { %910 = vmatmul.mubr.msk.bf16.gmra.mrb[12].mxu0 %vm302_vm1, %v990_v16 }
  0x33   : > { %926 = vmatmul.mubr.msk.bf16.gmra.mrb[12].mxu1 %vm302_vm1, %v991_v17 }
  0xed   : > { %v899_v19 = vpop.f32.mrb[0].mxu0 }
  0xee   : > { %v398_v20 = vadd.f32 %v899_v19, %v1173_v18  ;;  %v915_v21 = vpop.f32.mrb[0].mxu1  ;;  %v389_v22 = vpop.f32.mrb[1].mxu0 }
  0xef   : > { %v462_v23 = vadd.f32 %v915_v21, %v1173_v18  ;;  %v390_v24 = vadd.f32 %v1173_v18, %v389_v22  ;;  %v453_v25 = vpop.f32.mrb[1].mxu1  ;;  %v900_v26 = vpop.f32.mrb[2].mxu0 }
  0xf0   : > { %v518_v27 = vmax.f32 %v398_v20, 0.0  ;;  %v454_v28 = vadd.f32 %v1173_v18, %v453_v25  ;;  %v401_v29 = vadd.f32 %v900_v26, %v1173_v18  ;;  %v916_v30 = vpop.f32.mrb[2].mxu1  ;;  %v392_v31 = vpop.f32.mrb[3].mxu0 }
  0xf1   : > { %v534_v32 = vmax.f32 %v462_v23, 0.0  ;;  %v516_v33 = vmax.f32 %v390_v24, 0.0  ;;  %v465_v34 = vadd.f32 %v916_v30, %v1173_v18  ;;  %v393_v35 = vadd.f32 %v1173_v18, %v392_v31  ;;  %v456_v36 = vpop.f32.mrb[3].mxu1 }
  0xf2   : > { %655 = vst.msk [vmem:[%s1184_s8 + $0x10] sm:$0xff] %vm548_vm2, %v518_v27  ;;  %v532_v37 = vmax.f32 %v454_v28, 0.0  ;;  %v519_v38 = vmax.f32 %v401_v29, 0.0  ;;  %v457_v39 = vadd.f32 %v1173_v18, %v456_v36  ;;  %v552_v53 = vsel %vm548_vm2, %v518_v27, -inf }
  0xf3   : > { %671 = vst.msk [vmem:[%s1184_s8 + $0x90] sm:$0xff] %vm548_vm2, %v534_v32  ;;  %653 = vst.msk [vmem:[%s1184_s8] sm:$0xff] %vm548_vm2, %v516_v33  ;;  %v535_v40 = vmax.f32 %v465_v34, 0.0  ;;  %v517_v41 = vmax.f32 %v393_v35, 0.0  ;;  %v549_v44 = vsel %vm548_vm2, %v516_v33, -inf  ;;  %v604_v47 = vsel %vm548_vm2, %v534_v32, -inf }
  0xf4   : > { %v601_v42 = vsel %vm548_vm2, %v532_v37, -inf  ;;  %669 = vst.msk [vmem:[%s1184_s8 + $0x80] sm:$0xff] %vm548_vm2, %v532_v37  ;;  %656 = vst.msk [vmem:[%s1184_s8 + $0x18] sm:$0xff] %vm548_vm2, %v519_v38  ;;  %v533_v43 = vmax.f32 %v457_v39, 0.0  ;;  %v554_v12 = vsel %vm548_vm2, %v519_v38, -inf }
  0xf5   : > { %672 = vst.msk [vmem:[%s1184_s8 + $0x98] sm:$0xff] %vm548_vm2, %v535_v40  ;;  %v550_v45 = vsel %vm548_vm2, %v517_v41, -inf  ;;  %654 = vst.msk [vmem:[%s1184_s8 + $0x8] sm:$0xff] %vm548_vm2, %v517_v41  ;;  %v903_v46 = vpop.f32.mrb[4].mxu0  ;;  %v606_v6 = vsel %vm548_vm2, %v535_v40, -inf }
  0xf6   : > { %v551_v48 = vmax.f32 %v549_v44, %v550_v45  ;;  %v602_v49 = vsel %vm548_vm2, %v533_v43, -inf  ;;  %670 = vst.msk [vmem:[%s1184_s8 + $0x88] sm:$0xff] %vm548_vm2, %v533_v43  ;;  %v414_v50 = vadd.f32 %v903_v46, %v1173_v18  ;;  %v919_v51 = vpop.f32.mrb[4].mxu1  ;;  %v405_v52 = vpop.f32.mrb[5].mxu0 }
  0xf7   : > { %v603_v54 = vmax.f32 %v601_v42, %v602_v49  ;;  %v478_v55 = vadd.f32 %v919_v51, %v1173_v18  ;;  %v406_v56 = vadd.f32 %v1173_v18, %v405_v52  ;;  %v469_v57 = vpop.f32.mrb[5].mxu1  ;;  %v904_v58 = vpop.f32.mrb[6].mxu0 }
  0xf8   : > { %v553_v59 = vmax.f32 %v551_v48, %v552_v53  ;;  %v522_v60 = vmax.f32 %v414_v50, 0.0  ;;  %v470_v61 = vadd.f32 %v1173_v18, %v469_v57  ;;  %v417_v62 = vadd.f32 %v904_v58, %v1173_v18  ;;  %v920_v63 = vpop.f32.mrb[6].mxu1  ;;  %v408_v0 = vpop.f32.mrb[7].mxu0 }
  0xf9   : > { %v605_v1 = vmax.f32 %v603_v54, %v604_v47  ;;  %v538_v2 = vmax.f32 %v478_v55, 0.0  ;;  %v520_v3 = vmax.f32 %v406_v56, 0.0  ;;  %v481_v4 = vadd.f32 %v920_v63, %v1173_v18  ;;  %v472_v5 = vpop.f32.mrb[7].mxu1 }
  0xfa   : > { %659 = vst.msk [vmem:[%s1184_s8 + $0x30] sm:$0xff] %vm548_vm2, %v522_v60  ;;  %v536_v7 = vmax.f32 %v470_v61, 0.0  ;;  %v523_v8 = vmax.f32 %v417_v62, 0.0  ;;  %v409_v9 = vadd.f32 %v1173_v18, %v408_v0  ;;  %v565_v13 = vsel %vm548_vm2, %v522_v60, -inf }
  0xfb   : > { %v1219_v10 = vmax.f32 %v605_v1, %v606_v6  ;;  %675 = vst.msk [vmem:[%s1184_s8 + $0xb0] sm:$0xff] %vm548_vm2, %v538_v2  ;;  %657 = vst.msk [vmem:[%s1184_s8 + $0x20] sm:$0xff] %vm548_vm2, %v520_v3  ;;  %v539_v11 = vmax.f32 %v481_v4, 0.0  ;;  %v473_v15 = vadd.f32 %v1173_v18, %v472_v5  ;;  %v617_v16 = vsel %vm548_vm2, %v538_v2, -inf }
  0xfc   : > { %673 = vst.msk [vmem:[%s1184_s8 + $0xa0] sm:$0xff] %vm548_vm2, %v536_v7  ;;  %660 = vst.msk [vmem:[%s1184_s8 + $0x38] sm:$0xff] %vm548_vm2, %v523_v8  ;;  %v521_v14 = vmax.f32 %v409_v9, 0.0  ;;  %v562_v17 = vsel %vm548_vm2, %v520_v3, -inf  ;;  %v614_v19 = vsel %vm548_vm2, %v536_v7, -inf  ;;  %v555_v21 = vmax.f32 %v553_v59, %v554_v12 }
  0xfd   : > { %676 = vst.msk [vmem:[%s1184_s8 + $0xb8] sm:$0xff] %vm548_vm2, %v539_v11  ;;  %v907_v20 = vpop.f32.mrb[8].mxu0  ;;  %v567_v22 = vsel %vm548_vm2, %v523_v8, -inf  ;;  %v537_v24 = vmax.f32 %v473_v15, 0.0  ;;  %v608_v48 = vrot.slane %v1219_v10, 4  ;;  %v619_v49 = vsel %vm548_vm2, %v539_v11, -inf }
  0xfe   : > { %v563_v23 = vsel %vm548_vm2, %v521_v14, -inf  ;;  %658 = vst.msk [vmem:[%s1184_s8 + $0x28] sm:$0xff] %vm548_vm2, %v521_v14  ;;  %v430_v25 = vadd.f32 %v907_v20, %v1173_v18  ;;  %v923_v26 = vpop.f32.mrb[8].mxu1  ;;  %v421_v27 = vpop.f32.mrb[9].mxu0  ;;  %v556_v33 = vrot.slane %v555_v21, 4 }
  0xff   : > { %v564_v28 = vmax.f32 %v562_v17, %v563_v23  ;;  %v494_v29 = vadd.f32 %v923_v26, %v1173_v18  ;;  %v422_v30 = vadd.f32 %v1173_v18, %v421_v27  ;;  %v485_v31 = vpop.f32.mrb[9].mxu1  ;;  %v908_v32 = vpop.f32.mrb[10].mxu0  ;;  %v615_v34 = vsel %vm548_vm2, %v537_v24, -inf  ;;  %674 = vst.msk [vmem:[%s1184_s8 + $0xa8] sm:$0xff] %vm548_vm2, %v537_v24 }
 0x100   : > { %v526_v35 = vmax.f32 %v430_v25, 0.0  ;;  %v486_v36 = vadd.f32 %v1173_v18, %v485_v31  ;;  %v433_v37 = vadd.f32 %v908_v32, %v1173_v18  ;;  %v924_v38 = vpop.f32.mrb[10].mxu1  ;;  %v424_v39 = vpop.f32.mrb[11].mxu0  ;;  %v616_v41 = vmax.f32 %v614_v19, %v615_v34 }
 0x101   : > { %v566_v40 = vmax.f32 %v564_v28, %v565_v13  ;;  %v542_v42 = vmax.f32 %v494_v29, 0.0  ;;  %v524_v43 = vmax.f32 %v422_v30, 0.0  ;;  %v488_v44 = vpop.f32.mrb[11].mxu1  ;;  %v497_v47 = vadd.f32 %v924_v38, %v1173_v18 }
 0x102   : > { %663 = vst.msk [vmem:[%s1184_s8 + $0x50] sm:$0xff] %vm548_vm2, %v526_v35  ;;  %v540_v45 = vmax.f32 %v486_v36, 0.0  ;;  %v527_v46 = vmax.f32 %v433_v37, 0.0  ;;  %v618_v51 = vmax.f32 %v616_v41, %v617_v16  ;;  %v578_v52 = vsel %vm548_vm2, %v526_v35, -inf }
 0x103   : > { %v1254_v50 = vmax.f32 %v566_v40, %v567_v22  ;;  %679 = vst.msk [vmem:[%s1184_s8 + $0xd0] sm:$0xff] %vm548_vm2, %v542_v42  ;;  %661 = vst.msk [vmem:[%s1184_s8 + $0x40] sm:$0xff] %vm548_vm2, %v524_v43  ;;  %v630_v53 = vsel %vm548_vm2, %v542_v42, -inf  ;;  %v575_v54 = vsel %vm548_vm2, %v524_v43, -inf  ;;  %v543_v55 = vmax.f32 %v497_v47, 0.0 }
 0x104   : > { %677 = vst.msk [vmem:[%s1184_s8 + $0xc0] sm:$0xff] %vm548_vm2, %v540_v45  ;;  %664 = vst.msk [vmem:[%s1184_s8 + $0x58] sm:$0xff] %vm548_vm2, %v527_v46  ;;  %v425_v56 = vadd.f32 %v1173_v18, %v424_v39  ;;  %v627_v57 = vsel %vm548_vm2, %v540_v45, -inf  ;;  %v489_v58 = vadd.f32 %v1173_v18, %v488_v44  ;;  %v557_v60 = vmax.f32 %v555_v21, %v556_v33 }
 0x105   : > { %v911_v59 = vpop.f32.mrb[12].mxu0  ;;  %v620_v61 = vmax.f32 %v618_v51, %v619_v49  ;;  %v580_v62 = vsel %vm548_vm2, %v527_v46, -inf  ;;  %680 = vst.msk [vmem:[%s1184_s8 + $0xd8] sm:$0xff] %vm548_vm2, %v543_v55  ;;  %v609_v3 = vmax.f32 %v1219_v10, %v608_v48  ;;  %v632_v22 = vsel %vm548_vm2, %v543_v55, -inf }
 0x106   : > { %v525_v63 = vmax.f32 %v425_v56, 0.0  ;;  %v446_v0 = vadd.f32 %v911_v59, %v1173_v18  ;;  %v927_v1 = vpop.f32.mrb[12].mxu1  ;;  %v437_v2 = vpop.f32.mrb[13].mxu0  ;;  %v541_v4 = vmax.f32 %v489_v58, 0.0  ;;  %v558_v9 = vrot.slane %v557_v60, 2 }
 0x107   : > { %v510_v5 = vadd.f32 %v927_v1, %v1173_v18  ;;  %v438_v6 = vadd.f32 %v1173_v18, %v437_v2  ;;  %v501_v7 = vpop.f32.mrb[13].mxu1  ;;  %v912_v8 = vpop.f32.mrb[14].mxu0  ;;  %v569_v29 = vrot.slane %v1254_v50, 4  ;;  %v610_v40 = vrot.slane %v609_v3, 2 }
 0x108   : > { %v576_v11 = vsel %vm548_vm2, %v525_v63, -inf  ;;  %662 = vst.msk [vmem:[%s1184_s8 + $0x48] sm:$0xff] %vm548_vm2, %v525_v63  ;;  %v530_v12 = vmax.f32 %v446_v0, 0.0  ;;  %v502_v13 = vadd.f32 %v1173_v18, %v501_v7  ;;  %v449_v14 = vadd.f32 %v912_v8, %v1173_v18  ;;  %v928_v10 = vpop.f32.mrb[14].mxu1  ;;  %v440_v15 = vpop.f32.mrb[15].mxu0  ;;  %678 = vst.msk [vmem:[%s1184_s8 + $0xc8] sm:$0xff] %vm548_vm2, %v541_v4 }
 0x109   : > { %v577_v16 = vmax.f32 %v575_v54, %v576_v11  ;;  %v628_v17 = vsel %vm548_vm2, %v541_v4, -inf  ;;  %v546_v19 = vmax.f32 %v510_v5, 0.0  ;;  %v528_v20 = vmax.f32 %v438_v6, 0.0  ;;  %v504_v21 = vpop.f32.mrb[15].mxu1 }
 0x10a   : > { %v629_v23 = vmax.f32 %v627_v57, %v628_v17  ;;  %667 = vst.msk [vmem:[%s1184_s8 + $0x70] sm:$0xff] %vm548_vm2, %v530_v12  ;;  %v544_v24 = vmax.f32 %v502_v13, 0.0  ;;  %v531_v25 = vmax.f32 %v449_v14, 0.0  ;;  %v591_v27 = vsel %vm548_vm2, %v530_v12, -inf }
 0x10b   : > { %v579_v26 = vmax.f32 %v577_v16, %v578_v52  ;;  %683 = vst.msk [vmem:[%s1184_s8 + $0xf0] sm:$0xff] %vm548_vm2, %v546_v19  ;;  %665 = vst.msk [vmem:[%s1184_s8 + $0x60] sm:$0xff] %vm548_vm2, %v528_v20  ;;  %v513_v28 = vadd.f32 %v928_v10, %v1173_v18  ;;  %v643_v31 = vsel %vm548_vm2, %v546_v19, -inf  ;;  %v588_v32 = vsel %vm548_vm2, %v528_v20, -inf }
 0x10c   : > { %v631_v30 = vmax.f32 %v629_v23, %v630_v53  ;;  %681 = vst.msk [vmem:[%s1184_s8 + $0xe0] sm:$0xff] %vm548_vm2, %v544_v24  ;;  %668 = vst.msk [vmem:[%s1184_s8 + $0x78] sm:$0xff] %vm548_vm2, %v531_v25  ;;  %v441_v33 = vadd.f32 %v1173_v18, %v440_v15  ;;  %v505_v36 = vadd.f32 %v1173_v18, %v504_v21  ;;  %v621_v41 = vrot.slane %v620_v61, 4 }
 0x10d   : > { %v581_v34 = vmax.f32 %v579_v26, %v580_v62  ;;  %v547_v35 = vmax.f32 %v513_v28, 0.0  ;;  %v559_v37 = vmax.f32 %v557_v60, %v558_v9  ;;  %v640_v42 = vsel %vm548_vm2, %v544_v24, -inf }
 0x10e   : > { %v633_v38 = vmax.f32 %v631_v30, %v632_v22  ;;  %v529_v39 = vmax.f32 %v441_v33, 0.0  ;;  %v545_v43 = vmax.f32 %v505_v36, 0.0  ;;  %v570_v45 = vmax.f32 %v1254_v50, %v569_v29 }
 0x10f   : > { %684 = vst.msk [vmem:[%s1184_s8 + $0xf8] sm:$0xff] %vm548_vm2, %v547_v35  ;;  %v560_v44 = vrot.slane %v559_v37, 1  ;;  %v611_v47 = vmax.f32 %v609_v3, %v610_v40  ;;  %v622_v18 = vmax.f32 %v620_v61, %v621_v41  ;;  %v582_v48 = vrot.slane %v581_v34, 4 }
 0x110   : > { %v589_v46 = vsel %vm548_vm2, %v529_v39, -inf  ;;  %666 = vst.msk [vmem:[%s1184_s8 + $0x68] sm:$0xff] %vm548_vm2, %v529_v39  ;;  %v641_v51 = vsel %vm548_vm2, %v545_v43, -inf  ;;  %682 = vst.msk [vmem:[%s1184_s8 + $0xe8] sm:$0xff] %vm548_vm2, %v545_v43  ;;  %v571_v53 = vrot.slane %v570_v45, 2  ;;  %v593_v50 = vsel %vm548_vm2, %v531_v25, -inf }
 0x111   : > { %v590_v49 = vmax.f32 %v588_v32, %v589_v46  ;;  %v561_v52 = vmax.f32 %v559_v37, %v560_v44  ;;  %v642_v54 = vmax.f32 %v640_v42, %v641_v51  ;;  %v612_v55 = vrot.slane %v611_v47, 1 }
 0x112   : > { %v623_v56 = vrot.slane %v622_v18, 2  ;;  %v583_v57 = vmax.f32 %v581_v34, %v582_v48  ;;  %v572_v59 = vmax.f32 %v570_v45, %v571_v53  ;;  %v634_v60 = vrot.slane %v633_v38, 4 }
 0x113   : > { %v592_v58 = vmax.f32 %v590_v49, %v591_v27  ;;  %693 = vrot.lane.b32.xlu0 %v561_v52, %s1056_s9  ;;  %v645_v61 = vsel %vm548_vm2, %v547_v35, -inf  ;;  %v644_v62 = vmax.f32 %v642_v54, %v643_v31  ;;  %v613_v2 = vmax.f32 %v611_v47, %v612_v55 }
 0x114   : > { %v624_v63 = vmax.f32 %v622_v18, %v623_v56  ;;  %v584_v0 = vrot.slane %v583_v57, 2  ;;  %v573_v3 = vrot.slane %v572_v59, 1  ;;  %v635_v4 = vmax.f32 %v633_v38, %v634_v60 }
 0x115   : > { %v594_v1 = vmax.f32 %v592_v58, %v593_v50  ;;  %v646_v5 = vmax.f32 %v644_v62, %v645_v61 }
 0x116   : > { %v625_v6 = vrot.slane %v624_v63, 1  ;;  %v585_v7 = vmax.f32 %v583_v57, %v584_v0  ;;  %v574_v8 = vmax.f32 %v572_v59, %v573_v3  ;;  %v636_v9 = vrot.slane %v635_v4, 2 }
 0x117   : > { %701 = vrot.lane.b32.xlu0 %v613_v2, %s1056_s9  ;;  %v595_v11 = vrot.slane %v594_v1, 4  ;;  %v647_v14 = vrot.slane %v646_v5, 4 }
 0x118   : > { %v626_v12 = vmax.f32 %v624_v63, %v625_v6  ;;  %v586_v13 = vrot.slane %v585_v7, 1  ;;  %v637_v10 = vmax.f32 %v635_v4, %v636_v9 }
 0x119   : > { %v596_v15 = vmax.f32 %v594_v1, %v595_v11  ;;  %v648_v17 = vmax.f32 %v646_v5, %v647_v14 }
 0x11a   : > { %703 = vrot.lane.b32.xlu1 %v626_v12, %s1056_s9  ;;  %v587_v16 = vmax.f32 %v585_v7, %v586_v13  ;;  %v638_v19 = vrot.slane %v637_v10, 1 }
 0x11b   : > { %695 = vrot.lane.b32.xlu0 %v574_v8, %s1056_s9  ;;  %v597_v20 = vrot.slane %v596_v15, 2  ;;  %v649_v21 = vrot.slane %v648_v17, 2 }
 0x11c   : > { %v639_v22 = vmax.f32 %v637_v10, %v638_v19 }
 0x11d   : > { %v598_v23 = vmax.f32 %v596_v15, %v597_v20  ;;  %v650_v24 = vmax.f32 %v648_v17, %v649_v21 }
 0x11e   : > { %697 = vrot.lane.b32.xlu1 %v587_v16, %s1056_s9 }
 0x11f   : > { %705 = vrot.lane.b32.xlu0 %v639_v22, %s1056_s9  ;;  %v599_v25 = vrot.slane %v598_v23, 1  ;;  %v651_v27 = vrot.slane %v650_v24, 1 }
 0x121   : > { %v600_v26 = vmax.f32 %v598_v23, %v599_v25  ;;  %v652_v28 = vmax.f32 %v650_v24, %v651_v27 }
 0x123   : > { %699 = vrot.lane.b32.xlu1 %v600_v26, %s1056_s9 }
 0x127   : > { %707 = vrot.lane.b32.xlu1 %v652_v28, %s1056_s9 }
 0x185   : > { %v694_v29 = vpop.permute.xlu0 %693 }
 0x186   : > { %718 = vst.msk [vmem:[%s1184_s8] sm:$0xff] %vm717_vm3, %v694_v29  ;;  %719 = vst.msk [vmem:[%s1184_s8 + $0x8] sm:$0xff] %vm717_vm3, %v694_v29 }
 0x187   : > { %720 = vst.msk [vmem:[%s1184_s8 + $0x10] sm:$0xff] %vm717_vm3, %v694_v29  ;;  %721 = vst.msk [vmem:[%s1184_s8 + $0x18] sm:$0xff] %vm717_vm3, %v694_v29 }
 0x189   : > { %v702_v30 = vpop.permute.xlu0 %701 }
 0x18a   : > { %734 = vst.msk [vmem:[%s1184_s8 + $0x80] sm:$0xff] %vm717_vm3, %v702_v30  ;;  %735 = vst.msk [vmem:[%s1184_s8 + $0x88] sm:$0xff] %vm717_vm3, %v702_v30 }
 0x18b   : > { %736 = vst.msk [vmem:[%s1184_s8 + $0x90] sm:$0xff] %vm717_vm3, %v702_v30  ;;  %737 = vst.msk [vmem:[%s1184_s8 + $0x98] sm:$0xff] %vm717_vm3, %v702_v30 }
 0x18c   : > { %v704_v31 = vpop.permute.xlu1 %703 }
 0x18d   : > { %738 = vst.msk [vmem:[%s1184_s8 + $0xa0] sm:$0xff] %vm717_vm3, %v704_v31  ;;  %739 = vst.msk [vmem:[%s1184_s8 + $0xa8] sm:$0xff] %vm717_vm3, %v704_v31  ;;  %v696_v32 = vpop.permute.xlu0 %695 }
 0x18e   : > { %740 = vst.msk [vmem:[%s1184_s8 + $0xb0] sm:$0xff] %vm717_vm3, %v704_v31  ;;  %741 = vst.msk [vmem:[%s1184_s8 + $0xb8] sm:$0xff] %vm717_vm3, %v704_v31 }
 0x18f   : > { %722 = vst.msk [vmem:[%s1184_s8 + $0x20] sm:$0xff] %vm717_vm3, %v696_v32  ;;  %723 = vst.msk [vmem:[%s1184_s8 + $0x28] sm:$0xff] %vm717_vm3, %v696_v32 }
 0x190   : > { %724 = vst.msk [vmem:[%s1184_s8 + $0x30] sm:$0xff] %vm717_vm3, %v696_v32  ;;  %725 = vst.msk [vmem:[%s1184_s8 + $0x38] sm:$0xff] %vm717_vm3, %v696_v32  ;;  %v698_v33 = vpop.permute.xlu1 %697 }
 0x191   : > { %726 = vst.msk [vmem:[%s1184_s8 + $0x40] sm:$0xff] %vm717_vm3, %v698_v33  ;;  %727 = vst.msk [vmem:[%s1184_s8 + $0x48] sm:$0xff] %vm717_vm3, %v698_v33  ;;  %v706_v34 = vpop.permute.xlu0 %705 }
 0x192   : > { %728 = vst.msk [vmem:[%s1184_s8 + $0x50] sm:$0xff] %vm717_vm3, %v698_v33  ;;  %729 = vst.msk [vmem:[%s1184_s8 + $0x58] sm:$0xff] %vm717_vm3, %v698_v33 }
 0x193   : > { %742 = vst.msk [vmem:[%s1184_s8 + $0xc0] sm:$0xff] %vm717_vm3, %v706_v34  ;;  %743 = vst.msk [vmem:[%s1184_s8 + $0xc8] sm:$0xff] %vm717_vm3, %v706_v34 }
 0x194   : > { %744 = vst.msk [vmem:[%s1184_s8 + $0xd0] sm:$0xff] %vm717_vm3, %v706_v34  ;;  %745 = vst.msk [vmem:[%s1184_s8 + $0xd8] sm:$0xff] %vm717_vm3, %v706_v34 }
 0x195   : > { %v700_v35 = vpop.permute.xlu1 %699 }
 0x196   : > { %730 = vst.msk [vmem:[%s1184_s8 + $0x60] sm:$0xff] %vm717_vm3, %v700_v35  ;;  %731 = vst.msk [vmem:[%s1184_s8 + $0x68] sm:$0xff] %vm717_vm3, %v700_v35 }
 0x197   : > { %732 = vst.msk [vmem:[%s1184_s8 + $0x70] sm:$0xff] %vm717_vm3, %v700_v35  ;;  %733 = vst.msk [vmem:[%s1184_s8 + $0x78] sm:$0xff] %vm717_vm3, %v700_v35 }
 0x199   : > { %v708_v36 = vpop.permute.xlu1 %707 }
 0x19a   : > { %746 = vst.msk [vmem:[%s1184_s8 + $0xe0] sm:$0xff] %vm717_vm3, %v708_v36  ;;  %747 = vst.msk [vmem:[%s1184_s8 + $0xe8] sm:$0xff] %vm717_vm3, %v708_v36 }
 0x19b   : > { %748 = vst.msk [vmem:[%s1184_s8 + $0xf0] sm:$0xff] %vm717_vm3, %v708_v36  ;;  %749 = vst.msk [vmem:[%s1184_s8 + $0xf8] sm:$0xff] %vm717_vm3, %v708_v36 }
 0x19c   : > { %1005 = shalt.err (!%p1002_p3)
}
 0x19d   : > { %s1006_s28 = scalar_lea.hbm %s1384_s20, 4096  ;;  %s1010_s4 = scalar_lea.hbm %s1442_s3, 8192 }
 0x19e   : > { %p1007_p4 = scmp.ne.s32.totalorder %s1384_s20, %s1006_s28  ;;  %p1011_p9 = scmp.lt.u32.totalorder %s1384_s20, %s1442_s3 }
 0x19f   : > { %p1012_p10 = scmp.lt.u32.totalorder %s1010_s4, %s1006_s28  ;;  %p1014_p12 = scmp.lt.u32.totalorder %s1006_s28, %s1384_s20 }
 0x1a0   : > { %p1008_p7 = pnand %p1007_p4, %p1118_p5 }
 0x1a1   : > { %p1013_p11 = por %p1012_p10, %p1011_p9 }
 0x1a2   : > { %p1009_p8 = pneg %p1008_p7 }
 0x1a3   : > { %p1015_p13 = por %p1014_p12, %p1013_p11 }
 0x1a5   : > { %p1016_p0 = pnand %p1015_p13, %p1009_p8 }
 0x1a7   : > { %1019 = shalt.err (!%p1016_p0)
}
 0x1a8   : > { %s1058_s7 = smov 128   ;;  %s1059_s8 = smov 8  }
 0x1a9   : > { %933 = dma.vmem_to_hbm [thread:$0]  (%p1118_p5), %s1386_s11, 4096, %s1384_s20, %s1398_s16, %s1058_s7, %s1058_s7, %s1059_s8  }
 0x1aa PF: > { %p939_p1 = scmp.ge.s32.totalorder %s1054_s15, 2  ;;  %s780_s9 = sand.u32 1, %s1042_s12  }
 0x1ab   : > { %s781_s10 = scalar_lea.sflag [#allocation3], %s780_s9 }
 0x1ac   : > { %p936_p2 = pnand %p939_p1, %p1122_p6 }
 0x1ae   : > { %1037 = dma.done.wait (!%p936_p2), %s781_s10, 4096  }
 0x1af   : > { %1039 = vsyncadd (!%p936_p2), %s781_s10, 4294963200  ;;  %p13_p3 = scmp.ge.s32.totalorder %s1105_s18, 4   ;;  %s1445_s12 = smov %s1046_s13 }
 0x1b0   : > { %s1446_s13 = smov %s1050_s14  ;;  %s1447_s14 = smov %s1116_s21 }
 0x1b1   : > { %s1448_s15 = smov %s1105_s18  ;;  %15 = sbr.rel (!%p13_p3) target bundleno = 3 (0x3), region = 67 }
 0x1b8   :  { %786 = vsyncpa [#allocation3], 1 }
 0x1b9   :  { %788 = vsyncpa [#allocation3 + $0x1], 1 }

</bundles_post_ra>
